<compile_context>
chip_gen: v6e
topology: v6e:2x2x1
jax: 0.10.0
libtpu: 0.0.40
codegen_flags: <defaults>
</compile_context>

<pallas_src>
import math
import functools

import jax
import jax.numpy as jnp
from jax.experimental import pallas as pl
from jax.experimental.pallas import tpu as pltpu


# ----------------------------------------------------------------------------- helpers
def _make_divisible(v, divisor, min_value=None):
    if min_value is None:
        min_value = divisor
    new_v = max(min_value, int(v + divisor / 2) // divisor * divisor)
    if new_v < 0.9 * v:
        new_v += divisor
    return new_v


def _pick_bt(B, C, HW, hid, x_bytes):
    """Batch elements per grid step: ~2 MiB input tile, bounded FC intermediates,
    and at least 2 grid steps when B >= 2 (v7x megacore balance)."""
    per_batch_tile = C * HW * x_bytes
    bt = max(1, (2 * 1024 * 1024) // max(per_batch_tile, 1))
    # Cap the (Bt, C, hid) f32 broadcast intermediate at ~4 MiB.
    fc_bytes = C * hid * 4
    bt = min(bt, max(1, (4 * 1024 * 1024) // max(fc_bytes, 1)))
    if B >= 2:
        bt = min(bt, B // 2)
    bt = max(1, min(bt, B))
    while B % bt != 0:       # keep full blocks only (no ragged leading blocks)
        bt -= 1
    return bt


# ----------------------------------------------------------------------------- fused SE kernel
def _se_kernel(x_ref, w1_ref, b1_ref, w2_ref, b2_ref, o_ref, *, inv_hw):
    """Bt batch elements per grid step.

    x_ref : (Bt, C, HW)  channels on sublanes, (unpadded) spatial on lanes
    w1_ref: (hid, C)   b1_ref: (1, hid)      -- PyTorch nn.Linear layout (out, in)
    w2_ref: (C, hid)   b2_ref: (C, 1)
    o_ref : (Bt, C, HW)
    """
    # Global average pool: lane-axis reduce over the true spatial extent.
    pooled = jnp.sum(x_ref[...].astype(jnp.float32), axis=2) * inv_hw      # (Bt, C)

    # FC1 + ReLU (VPU broadcast-multiply + lane reduce; far too small for the MXU).
    w1 = w1_ref[...].astype(jnp.float32)                                   # (hid, C)
    a1 = jnp.sum(pooled[:, None, :] * w1[None, :, :], axis=2)              # (Bt, hid)
    y1 = jnp.maximum(a1 + b1_ref[...].astype(jnp.float32), 0.0)            # (Bt, hid)

    # FC2 + h_sigmoid (relu6(x+3)/6).  keepdims=True lands the gate with C on
    # sublanes -> no XLU transpose before the broadcast rescale below.
    w2 = w2_ref[...].astype(jnp.float32)                                   # (C, hid)
    a2 = jnp.sum(y1[:, None, :] * w2[None, :, :], axis=2, keepdims=True)   # (Bt, C, 1)
    a2 = a2 + b2_ref[...][None, :, :].astype(jnp.float32)                  # (Bt, C, 1)
    gate = jnp.clip(a2 + 3.0, 0.0, 6.0) * (1.0 / 6.0)                      # (Bt, C, 1)

    # Broadcast channel re-scale; re-load the tile from VMEM (cheap vld, no vreg pressure).
    o_ref[...] = (x_ref[...].astype(jnp.float32) * gate).astype(o_ref.dtype)


def se_layer(x_nchw, params):
    """Fused SELayer forward: x (B, C, H, W) -> (B, C, H, W), dtype preserved."""
    w1, b1, w2, b2 = params['w1'], params['b1'], params['w2'], params['b2']
    B, C, H, W = x_nchw.shape
    hid = w1.shape[0]
    HW = H * W

    x3 = x_nchw.reshape(B, C, HW)                       # free view; no pad, no extra HBM pass
    bt = _pick_bt(B, C, HW, hid, x3.dtype.itemsize)
    grid = (B // bt,)

    kernel = functools.partial(_se_kernel, inv_hw=1.0 / float(HW))

    out = pl.pallas_call(
        kernel,
        out_shape=jax.ShapeDtypeStruct((B, C, HW), x3.dtype),
        grid_spec=pltpu.PrefetchScalarGridSpec(
            num_scalar_prefetch=0,
            grid=grid,
            in_specs=[
                # Feature-map tile: last two block dims equal the full array dims.
                pl.BlockSpec((bt, C, HW), lambda b: (b, 0, 0)),
                # Constant block index -> weights/biases stay VMEM-resident across steps.
                pl.BlockSpec((hid, C), lambda b: (0, 0)),   # fc1 weight
                pl.BlockSpec((1, hid), lambda b: (0, 0)),   # fc1 bias
                pl.BlockSpec((C, hid), lambda b: (0, 0)),   # fc2 weight
                pl.BlockSpec((C, 1), lambda b: (0, 0)),     # fc2 bias (channels on sublanes)
            ],
            out_specs=pl.BlockSpec((bt, C, HW), lambda b: (b, 0, 0)),
        ),
        compiler_params=pltpu.CompilerParams(
            dimension_semantics=("parallel",),              # batch tiles -> both TCs on v7x
            vmem_limit_bytes=32 * 1024 * 1024,              # safe under v7x's 64 MiB physical
        ),
    )(x3, w1, b1.reshape(1, hid), w2, b2.reshape(C, 1))

    return out.reshape(B, C, H, W)


# ----------------------------------------------------------------------------- reference & init
def se_layer_ref(x, params):
    """Pure-JAX reference with identical semantics (for a tolerance check)."""
    y = jnp.mean(x.astype(jnp.float32), axis=(2, 3))                      # (B, C)
    y = jnp.maximum(y @ params['w1'].T + params['b1'], 0.0)
    y = y @ params['w2'].T + params['b2']
    y = jnp.clip(y + 3.0, 0.0, 6.0) / 6.0
    return (x.astype(jnp.float32) * y[:, :, None, None]).astype(x.dtype)


def init_se_params(key, channel, reduction=4):
    hid = _make_divisible(channel // reduction, 8)
    k1, k2, k3, k4 = jax.random.split(key, 4)
    # Deterministic example weights in PyTorch nn.Linear layout (out_features, in_features).
    return {
        'w1': jax.random.normal(k1, (hid, channel), jnp.float32) / math.sqrt(channel),
        'b1': 0.1 * jax.random.normal(k2, (hid,), jnp.float32),
        'w2': jax.random.normal(k3, (channel, hid), jnp.float32) / math.sqrt(hid),
        'b2': 0.1 * jax.random.normal(k4, (channel,), jnp.float32),
    }


# ----------------------------------------------------------------------------- main
if __name__ == "__main__":
    channel, B, H, W = 16, 2, 16, 16            # typical small MobileNetV3 SE stage; hid -> 8

    key = jax.random.PRNGKey(0)
    kx, kp = jax.random.split(key)
    x = jax.random.normal(kx, (B, channel, H, W), dtype=jnp.float32)   # NCHW, like PyTorch
    params = init_se_params(kp, channel)

    fwd = jax.jit(se_layer)
    out = fwd(x, params)
    jax.block_until_ready(out)

    ref = se_layer_ref(x, params)
    assert out.shape == x.shape and out.dtype == x.dtype
    err = float(jnp.max(jnp.abs(out - ref)))
    assert jnp.allclose(out, ref, rtol=1e-4, atol=1e-4), f"max abs err {err}"

    print("KERNEL_OK")
</pallas_src>

<mosaic_0001>
module attributes {stable_mosaic.version = 11 : i64} {
  func.func @_se_kernel(%arg0: i32, %arg1: memref<1x16x256xf32, #tpu.memory_space<vmem>>, %arg2: memref<8x16xf32, #tpu.memory_space<vmem>>, %arg3: memref<1x8xf32, #tpu.memory_space<vmem>>, %arg4: memref<16x8xf32, #tpu.memory_space<vmem>>, %arg5: memref<16x1xf32, #tpu.memory_space<vmem>>, %arg6: memref<1x16x256xf32, #tpu.memory_space<vmem>>) attributes {dimension_semantics = [#tpu.dimension_semantics<parallel>], iteration_bounds = array<i64: 2>, scalar_prefetch = 0 : i64, scratch_operands = 0 : i64, tpu.core_type = #tpu.core_type<tc>, window_params = [{transform_indices = @transform_0, window_bounds = array<i64: 1, 16, 256>}, {pipeline_mode = #tpu.pipeline_mode<synchronous>, transform_indices = @transform_1, window_bounds = array<i64: 8, 16>}, {pipeline_mode = #tpu.pipeline_mode<synchronous>, transform_indices = @transform_2, window_bounds = array<i64: 1, 8>}, {pipeline_mode = #tpu.pipeline_mode<synchronous>, transform_indices = @transform_3, window_bounds = array<i64: 16, 8>}, {pipeline_mode = #tpu.pipeline_mode<synchronous>, transform_indices = @transform_4, window_bounds = array<i64: 16, 1>}, {transform_indices = @transform_5, window_bounds = array<i64: 1, 16, 256>}]} {
    %c0 = arith.constant 0 : index
    %c0_0 = arith.constant 0 : index
    %c0_1 = arith.constant 0 : index
    %0 = vector.load %arg1[%c0, %c0_0, %c0_1] : memref<1x16x256xf32, #tpu.memory_space<vmem>>, vector<1x16x256xf32>
    %cst = arith.constant dense<0.000000e+00> : vector<1x16xf32>
    %1 = vector.multi_reduction <add>, %0, %cst [2] : vector<1x16x256xf32> to vector<1x16xf32>
    %cst_2 = arith.constant 3.906250e-03 : f32
    %2 = vector.broadcast %cst_2 : f32 to vector<1x16xf32>
    %3 = arith.mulf %1, %2 : vector<1x16xf32>
    %c0_3 = arith.constant 0 : index
    %c0_4 = arith.constant 0 : index
    %4 = vector.load %arg2[%c0_3, %c0_4] : memref<8x16xf32, #tpu.memory_space<vmem>>, vector<8x16xf32>
    %5 = vector.shape_cast %3 : vector<1x16xf32> to vector<1x1x16xf32>
    %6 = vector.shape_cast %4 : vector<8x16xf32> to vector<1x8x16xf32>
    %7 = vector.broadcast %5 : vector<1x1x16xf32> to vector<1x8x16xf32>
    %8 = arith.mulf %7, %6 : vector<1x8x16xf32>
    %cst_5 = arith.constant dense<0.000000e+00> : vector<1x8xf32>
    %9 = vector.multi_reduction <add>, %8, %cst_5 [2] : vector<1x8x16xf32> to vector<1x8xf32>
    %c0_6 = arith.constant 0 : index
    %c0_7 = arith.constant 0 : index
    %10 = vector.load %arg3[%c0_6, %c0_7] : memref<1x8xf32, #tpu.memory_space<vmem>>, vector<1x8xf32>
    %11 = arith.addf %9, %10 : vector<1x8xf32>
    %cst_8 = arith.constant 0.000000e+00 : f32
    %12 = vector.broadcast %cst_8 : f32 to vector<1x8xf32>
    %13 = arith.maximumf %11, %12 : vector<1x8xf32>
    %c0_9 = arith.constant 0 : index
    %c0_10 = arith.constant 0 : index
    %14 = vector.load %arg4[%c0_9, %c0_10] : memref<16x8xf32, #tpu.memory_space<vmem>>, vector<16x8xf32>
    %15 = vector.shape_cast %13 : vector<1x8xf32> to vector<1x1x8xf32>
    %16 = vector.shape_cast %14 : vector<16x8xf32> to vector<1x16x8xf32>
    %17 = vector.broadcast %15 : vector<1x1x8xf32> to vector<1x16x8xf32>
    %18 = arith.mulf %17, %16 : vector<1x16x8xf32>
    %cst_11 = arith.constant dense<0.000000e+00> : vector<1x16xf32>
    %19 = vector.multi_reduction <add>, %18, %cst_11 [2] : vector<1x16x8xf32> to vector<1x16xf32>
    %20 = vector.shape_cast %19 : vector<1x16xf32> to vector<1x16x1xf32>
    %c0_12 = arith.constant 0 : index
    %c0_13 = arith.constant 0 : index
    %21 = vector.load %arg5[%c0_12, %c0_13] : memref<16x1xf32, #tpu.memory_space<vmem>>, vector<16x1xf32>
    %22 = vector.shape_cast %21 : vector<16x1xf32> to vector<1x16x1xf32>
    %23 = arith.addf %20, %22 : vector<1x16x1xf32>
    %cst_14 = arith.constant 3.000000e+00 : f32
    %24 = vector.broadcast %cst_14 : f32 to vector<1x16x1xf32>
    %25 = arith.addf %23, %24 : vector<1x16x1xf32>
    %cst_15 = arith.constant 0.000000e+00 : f32
    %cst_16 = arith.constant 6.000000e+00 : f32
    %26 = vector.broadcast %cst_15 : f32 to vector<1x16x1xf32>
    %27 = arith.maximumf %26, %25 : vector<1x16x1xf32>
    %28 = vector.broadcast %cst_16 : f32 to vector<1x16x1xf32>
    %29 = arith.minimumf %28, %27 : vector<1x16x1xf32>
    %cst_17 = arith.constant 0.166666672 : f32
    %30 = vector.broadcast %cst_17 : f32 to vector<1x16x1xf32>
    %31 = arith.mulf %29, %30 : vector<1x16x1xf32>
    %c0_18 = arith.constant 0 : index
    %c0_19 = arith.constant 0 : index
    %c0_20 = arith.constant 0 : index
    %32 = vector.load %arg1[%c0_18, %c0_19, %c0_20] : memref<1x16x256xf32, #tpu.memory_space<vmem>>, vector<1x16x256xf32>
    %33 = vector.broadcast %31 : vector<1x16x1xf32> to vector<1x16x256xf32>
    %34 = arith.mulf %32, %33 : vector<1x16x256xf32>
    %c0_21 = arith.constant 0 : index
    %c0_22 = arith.constant 0 : index
    %c0_23 = arith.constant 0 : index
    %35 = vector.load %arg6[%c0_21, %c0_22, %c0_23] : memref<1x16x256xf32, #tpu.memory_space<vmem>>, vector<1x16x256xf32>
    tpu.vector_store %arg6[%c0_21, %c0_22, %c0_23], %34 {strides = array<i32>} : memref<1x16x256xf32, #tpu.memory_space<vmem>>, vector<1x16x256xf32>,
    return
  }
  func.func @transform_0(%arg0: i32) -> (i32, i32, i32) {
    %c0_i32 = arith.constant 0 : i32
    %c0_i32_0 = arith.constant 0 : i32
    %c0_i32_1 = arith.constant 0 : i32
    return %arg0, %c0_i32, %c0_i32_0 : i32, i32, i32
  }
  func.func @transform_1(%arg0: i32) -> (i32, i32) {
    %c0_i32 = arith.constant 0 : i32
    %c0_i32_0 = arith.constant 0 : i32
    %c0_i32_1 = arith.constant 0 : i32
    return %c0_i32, %c0_i32_0 : i32, i32
  }
  func.func @transform_2(%arg0: i32) -> (i32, i32) {
    %c0_i32 = arith.constant 0 : i32
    %c0_i32_0 = arith.constant 0 : i32
    %c0_i32_1 = arith.constant 0 : i32
    return %c0_i32, %c0_i32_0 : i32, i32
  }
  func.func @transform_3(%arg0: i32) -> (i32, i32) {
    %c0_i32 = arith.constant 0 : i32
    %c0_i32_0 = arith.constant 0 : i32
    %c0_i32_1 = arith.constant 0 : i32
    return %c0_i32, %c0_i32_0 : i32, i32
  }
  func.func @transform_4(%arg0: i32) -> (i32, i32) {
    %c0_i32 = arith.constant 0 : i32
    %c0_i32_0 = arith.constant 0 : i32
    %c0_i32_1 = arith.constant 0 : i32
    return %c0_i32, %c0_i32_0 : i32, i32
  }
  func.func @transform_5(%arg0: i32) -> (i32, i32, i32) {
    %c0_i32 = arith.constant 0 : i32
    %c0_i32_0 = arith.constant 0 : i32
    %c0_i32_1 = arith.constant 0 : i32
    return %arg0, %c0_i32, %c0_i32_0 : i32, i32, i32
  }
}

</mosaic_0001>

<bundles_post_ra>
// kernel: se_layer.1
= control target key start
LH: loop header
LB: loop body
LE: loop exit
PB: predicated region body
PF: predicated region fallthrough
CT: control target
= control target key end

     0   :  { %s978_s18 = smov 0   ;;  %s1155_s0 = inlined_call_operand.vmem [shape: f32[2,16,256], index: 0, kind: input, shape index: {}]   ;;  %s1156_s1 = inlined_call_operand.vmem [shape: f32[8,16], index: 1, kind: input, shape index: {}]   ;;  %s1157_s2 = inlined_call_operand.vmem [shape: f32[1,8], index: 2, kind: input, shape index: {}]   ;;  %s1158_s3 = inlined_call_operand.vmem [shape: f32[16,8], index: 3, kind: input, shape index: {}]   ;;  %s1159_s4 = inlined_call_operand.vmem [shape: f32[16,1], index: 4, kind: input, shape index: {}]   ;;  %s1160_s5 = inlined_call_operand.vmem [shape: f32[2,16,256], index: 5, kind: output, shape index: {}]  }
   0x1 LB: > { %s914_s19 = sadd.s32 4294967295, %s945_s18   ;;  %p918_p0 = scmp.ge.s32.totalorder %s945_s18, 1  ;;  %s945_s18 = sphi %s978_s18, %s15_s18  }
   0x2   : > { %p187_p1 = scmp.lt.s32.totalorder %s945_s18, 3 }
   0x4   : > { %p188_p2 = pnand %p918_p0, %p187_p1 }
   0x5   : > { %p215_p3 = scmp.lt.s32.totalorder (!%p188_p2), %s914_s19, 1 }
   0x6   : > { %191 = sbr.rel (%p188_p2) target bundleno = 898 (0x382), region = 40 }
   0xb   : > { %v239_v0 = vlaneseq  ;;  %s1162_s19 = smov (!%p215_p3, %s914_s19), 1  ;;  %v237_v2 = vld [vmem:[%s1156_s1] sm:$0xff]  ;;  %v947_v16 = vmov 0   ;;  %v1047_v58 = vld [vmem:[%s1158_s3 + $0x8] sm:$0xff]  ;;  %vm434_vm0 = vcmask 130112   ;;  %vm499_vm1 = vcmask 1041409  }
   0xc   : > { %s926_s22 = sshll.u32 %s1162_s19, 5  ;;  %938 = vset.pattern.permute.xlu0 %v947_v16  ;;  %937 = vset.pattern.permute.xlu1 %v947_v16  ;;  %vm501_vm2 = vcmask 1042434   ;;  %vm503_vm3 = vcmask 1043459   ;;  %vm505_vm4 = vcmask 1044484   ;;  %vm507_vm5 = vcmask 1045509  }
   0xd   : > { %v987_v1 = vshrl.u32 %v239_v0, 7  ;;  %s219_s25 = scalar_lea.vmem %s1155_s0, %s926_s22  ;;  %vm509_vm6 = vcmask 1046534   ;;  %vm511_vm7 = vcmask 1047559   ;;  %vm514_vm8 = vcmask 130048   ;;  %s224_s13 = scalar_lea.vmem %s1160_s5, %s926_s22 }
   0xe   : > { %v1004_v5 = vld [vmem:[%s219_s25] sm:$0xff]  ;;  %v1006_v6 = vld [vmem:[%s219_s25 + $0x8] sm:$0xff]  ;;  %v1008_v7 = vld [vmem:[%s219_s25 + $0x10] sm:$0xff]  ;;  %vm822_vm9 = vcmask 64512  }
   0xf   : > { %v995_v3 = vsub.s32 0, %v987_v1  ;;  %v229_v8 = vadd.f32 %v1006_v6, %v1004_v5  ;;  %v1012_v9 = vld [vmem:[%s219_s25 + $0x18] sm:$0xff]  ;;  %v1015_v10 = vsub.s32 1, %v987_v1  ;;  %v1021_v13 = vsub.s32 2, %v987_v1 }
  0x10   : > { %v232_v11 = vadd.f32 %v1012_v9, %v1008_v7  ;;  %v1025_v15 = vsub.s32 3, %v987_v1  ;;  %v1029_v18 = vsub.s32 4, %v987_v1  ;;  %v1033_v20 = vsub.s32 5, %v987_v1 }
  0x11   : > { %v242_v4 = vrot.slane %v237_v2, %v995_v3  ;;  %230 = vadd.xlane.f32.xlu0 %v229_v8  ;;  %v253_v12 = vrot.slane %v237_v2, %v1015_v10  ;;  %v264_v14 = vrot.slane %v237_v2, %v1021_v13  ;;  %v1037_v22 = vsub.s32 6, %v987_v1  ;;  %v530_v8 = vld [vmem:[%s1158_s3] sm:$0xff] }
  0x12   : > { %v275_v17 = vrot.slane %v237_v2, %v1025_v15  ;;  %v286_v19 = vrot.slane %v237_v2, %v1029_v18  ;;  %v297_v21 = vrot.slane %v237_v2, %v1033_v20  ;;  %v1041_v24 = vsub.s32 7, %v987_v1 }
  0x13   : > { %244 = vbcast.lane.b32.xlu1 %v242_v4, 256  ;;  %v308_v23 = vrot.slane %v237_v2, %v1037_v22  ;;  %v614_v61 = vrot.slane %v1047_v58, %v1025_v15  ;;  %v600_v16 = vrot.slane %v1047_v58, %v1015_v10 }
  0x14   : > { %v319_v25 = vrot.slane %v237_v2, %v1041_v24  ;;  %v635_v2 = vrot.slane %v1047_v58, %v1037_v22 }
  0x15   : > { %233 = vadd.xlane.f32.xlu0 %v232_v11  ;;  %v537_v11 = vrot.slane %v530_v8, %v995_v3 }
  0x17   : > { %248 = vbcast.lane.b32.xlu1 %v242_v4, 264  ;;  %v923_v4 = vld [vmem:[%s1157_s2] ss:$0 sm:$0xff] }
  0x1b   : > { %259 = vbcast.lane.b32.xlu1 %v253_v12, 264 }
  0x1f   : > { %266 = vbcast.lane.b32.xlu1 %v264_v14, 256 }
  0x23   : > { %270 = vbcast.lane.b32.xlu1 %v264_v14, 264  ;;  %v593_v14 = vrot.slane %v1047_v58, %v995_v3  ;;  %v621_v3 = vrot.slane %v1047_v58, %v1029_v18 }
  0x27   : > { %277 = vbcast.lane.b32.xlu1 %v275_v17, 256 }
  0x2b   : > { %281 = vbcast.lane.b32.xlu1 %v275_v17, 264  ;;  %255 = vbcast.lane.b32.xlu0 %v253_v12, 256  ;;  %v544_v12 = vrot.slane %v530_v8, %v1015_v10  ;;  %v551_v17 = vrot.slane %v530_v8, %v1021_v13  ;;  %v572_v10 = vrot.slane %v530_v8, %v1033_v20 }
  0x2f   : > { %288 = vbcast.lane.b32.xlu1 %v286_v19, 256  ;;  %292 = vbcast.lane.b32.xlu0 %v286_v19, 264  ;;  %v607_v19 = vrot.slane %v1047_v58, %v1021_v13  ;;  %v579_v13 = vrot.slane %v530_v8, %v1037_v22 }
  0x33   : > { %299 = vbcast.lane.b32.xlu1 %v297_v21, 256  ;;  %303 = vbcast.lane.b32.xlu0 %v297_v21, 264  ;;  %v558_v21 = vrot.slane %v530_v8, %v1025_v15  ;;  %v586_v15 = vrot.slane %v530_v8, %v1041_v24 }
  0x37   : > { %310 = vbcast.lane.b32.xlu1 %v308_v23, 256  ;;  %314 = vbcast.lane.b32.xlu0 %v308_v23, 264  ;;  %v565_v23 = vrot.slane %v530_v8, %v1029_v18 }
  0x3b   : > { %321 = vbcast.lane.b32.xlu1 %v319_v25, 256  ;;  %325 = vbcast.lane.b32.xlu0 %v319_v25, 264  ;;  %v628_v25 = vrot.slane %v1047_v58, %v1033_v20 }
  0x85   : > { %v245_v26 = vpop.permute.xlu1 %244 }
  0x89   : > { %v249_v27 = vpop.permute.xlu1 %248 }
  0x8d   : > { %v260_v28 = vpop.permute.xlu1 %259 }
  0x91   : > { %v267_v29 = vpop.permute.xlu1 %266 }
  0x95   : > { %v271_v30 = vpop.permute.xlu1 %270 }
  0x99   : > { %v278_v31 = vpop.permute.xlu1 %277 }
  0x9a   : > { %v231_v32 = vpop.xlane.xlu0 %230 }
  0x9b   : > { %v235_v33 = vmul.f32 0.00390625, %v231_v32 }
  0x9d   : > { %v343_v34 = vmul.f32 %v245_v26, %v235_v33  ;;  %v282_v35 = vpop.permute.xlu1 %281  ;;  %v347_v42 = vmul.f32 %v267_v29, %v235_v33  ;;  %v349_v44 = vmul.f32 %v278_v31, %v235_v33 }
  0x9e   : > { %v234_v36 = vpop.xlane.xlu0 %233 }
  0x9f   : > { %v236_v37 = vmul.f32 0.00390625, %v234_v36  ;;  %376 = vperm.xlu1 %937, %v343_v34  }
  0xa1   : > { %v344_v38 = vmul.f32 %v249_v27, %v236_v37  ;;  %v289_v41 = vpop.permute.xlu1 %288  ;;  %v346_v43 = vmul.f32 %v260_v28, %v236_v37  ;;  %v348_v47 = vmul.f32 %v271_v30, %v236_v37  ;;  %v350_v49 = vmul.f32 %v282_v35, %v236_v37 }
  0xa2   : > { %v256_v39 = vpop.permute.xlu0 %255  ;;  %v351_v48 = vmul.f32 %v289_v41, %v235_v33 }
  0xa3   : > { %v345_v40 = vmul.f32 %v256_v39, %v235_v33  ;;  %379 = vperm.xlu0 %938, %v344_v38  }
  0xa5   : > { %382 = vperm.xlu1 %937, %v345_v40   ;;  %v300_v45 = vpop.permute.xlu1 %299 }
  0xa6   : > { %v293_v46 = vpop.permute.xlu0 %292  ;;  %v353_v52 = vmul.f32 %v300_v45, %v235_v33 }
  0xa7   : > { %388 = vperm.xlu0 %938, %v347_v42   ;;  %v352_v53 = vmul.f32 %v293_v46, %v236_v37 }
  0xa9   : > { %385 = vperm.xlu1 %937, %v346_v43   ;;  %v311_v50 = vpop.permute.xlu1 %310 }
  0xaa   : > { %v304_v51 = vpop.permute.xlu0 %303  ;;  %v355_v54 = vmul.f32 %v311_v50, %v235_v33 }
  0xab   : > { %394 = vperm.xlu0 %938, %v349_v44   ;;  %v354_v57 = vmul.f32 %v304_v51, %v236_v37 }
  0xad   : > { %391 = vperm.xlu1 %937, %v348_v47   ;;  %v322_v55 = vpop.permute.xlu1 %321 }
  0xae   : > { %v315_v56 = vpop.permute.xlu0 %314  ;;  %v357_v59 = vmul.f32 %v322_v55, %v235_v33  ;;  %v424_v33 = vand.u32 127, %v239_v0 }
  0xaf   : > { %400 = vperm.xlu0 %938, %v351_v48   ;;  %v356_v60 = vmul.f32 %v315_v56, %v236_v37 }
  0xb0   : > { %v429_v35 = vadd.s32 4294967288, %v424_v33 }
  0xb1   : > { %397 = vperm.xlu1 %937, %v350_v49  }
  0xb2   : > { %v326_v62 = vpop.permute.xlu0 %325  ;;  %v432_v22 = vsub.s32 %v429_v35, %v987_v1 }
  0xb3   : > { %406 = vperm.xlu0 %938, %v353_v52   ;;  %v358_v63 = vmul.f32 %v326_v62, %v236_v37  ;;  %v1080_v37 = vsub.s32 %v424_v33, %v987_v1 }
  0xb5   : > { %403 = vperm.xlu1 %937, %v352_v53  }
  0xb7   : > { %412 = vperm.xlu0 %938, %v355_v54  }
  0xb9   : > { %409 = vperm.xlu1 %937, %v354_v57  }
  0xbb   : > { %418 = vperm.xlu0 %938, %v357_v59  }
  0xbd   : > { %415 = vperm.xlu1 %937, %v356_v60  }
  0xbf   : > { %616 = vbcast.lane.b32.xlu0 %v614_v61, 256 }
  0xc1   : > { %421 = vperm.xlu1 %937, %v358_v63  }
  0xc3   : > { %637 = vbcast.lane.b32.xlu0 %v635_v2, 256 }
  0xc5   : > { %525 = vbcast.lane.b32.xlu1 %v923_v4, 256 }
  0xc9   : > { %539 = vbcast.lane.b32.xlu1 %v537_v11, 256 }
  0xcd   : > { %546 = vbcast.lane.b32.xlu1 %v544_v12, 256 }
  0xd1   : > { %595 = vbcast.lane.b32.xlu1 %v593_v14, 256 }
  0xd5   : > { %602 = vbcast.lane.b32.xlu1 %v600_v16, 256 }
  0xd9   : > { %553 = vbcast.lane.b32.xlu1 %v551_v17, 256 }
  0xdd   : > { %609 = vbcast.lane.b32.xlu1 %v607_v19, 256 }
  0xe1   : > { %560 = vbcast.lane.b32.xlu1 %v558_v21, 256 }
  0xe5   : > { %567 = vbcast.lane.b32.xlu1 %v565_v23, 256  ;;  %v642_v23 = vrot.slane %v1047_v58, %v1041_v24 }
  0xe9   : > { %623 = vbcast.lane.b32.xlu1 %v621_v3, 256 }
  0xed   : > { %574 = vbcast.lane.b32.xlu1 %v572_v10, 256 }
  0xf1   : > { %630 = vbcast.lane.b32.xlu1 %v628_v25, 256 }
  0xf5   : > { %581 = vbcast.lane.b32.xlu1 %v579_v13, 256 }
  0xf9   : > { %588 = vbcast.lane.b32.xlu1 %v586_v15, 256 }
 0x11a   : > { %v377_v26 = vpop.permute.xlu1 %376 }
 0x11b   : > { %v428_v46 = vrot.slane %v377_v26, %v1080_v37 }
 0x11e   : > { %v380_v27 = vpop.permute.xlu0 %379 }
 0x11f   : > { %v433_v42 = vrot.slane %v380_v27, %v432_v22 }
 0x120   : > { %v383_v28 = vpop.permute.xlu1 %382 }
 0x121   : > { %v439_v43 = vrot.slane %v383_v28, %v1080_v37  ;;  %v435_v52 = vsel %vm434_vm0, %v433_v42, %v428_v46 }
 0x122   : > { %v389_v29 = vpop.permute.xlu0 %388 }
 0x123   : > { %v448_v0 = vrot.slane %v389_v29, %v1080_v37 }
 0x124   : > { %v386_v30 = vpop.permute.xlu1 %385 }
 0x125   : > { %v443_v38 = vrot.slane %v386_v30, %v432_v22 }
 0x126   : > { %v395_v18 = vpop.permute.xlu0 %394 }
 0x127   : > { %v444_v47 = vsel %vm434_vm0, %v443_v38, %v439_v43  ;;  %v457_v1 = vrot.slane %v395_v18, %v1080_v37 }
 0x128   : > { %v392_v31 = vpop.permute.xlu1 %391  ;;  %v500_v56 = vsel %vm499_vm1, %v444_v47, %v435_v52 }
 0x129   : > { %v452_v39 = vrot.slane %v392_v31, %v432_v22 }
 0x12a   : > { %v401_v32 = vpop.permute.xlu0 %400 }
 0x12b   : > { %v453_v49 = vsel %vm434_vm0, %v452_v39, %v448_v0  ;;  %v466_v50 = vrot.slane %v401_v32, %v1080_v37 }
 0x12c   : > { %v398_v34 = vpop.permute.xlu1 %397  ;;  %v502_v61 = vsel %vm501_vm2, %v453_v49, %v500_v56 }
 0x12d   : > { %v461_v44 = vrot.slane %v398_v34, %v432_v22 }
 0x12e   : > { %v407_v20 = vpop.permute.xlu0 %406 }
 0x12f   : > { %v462_v53 = vsel %vm434_vm0, %v461_v44, %v457_v1  ;;  %v475_v54 = vrot.slane %v407_v20, %v1080_v37 }
 0x130   : > { %v404_v36 = vpop.permute.xlu1 %403  ;;  %v504_v63 = vsel %vm503_vm3, %v462_v53, %v502_v61 }
 0x131   : > { %v470_v45 = vrot.slane %v404_v36, %v432_v22 }
 0x132   : > { %v413_v40 = vpop.permute.xlu0 %412 }
 0x133   : > { %v471_v57 = vsel %vm434_vm0, %v470_v45, %v466_v50  ;;  %v484_v59 = vrot.slane %v413_v40, %v1080_v37 }
 0x134   : > { %v410_v41 = vpop.permute.xlu1 %409  ;;  %v506_v8 = vsel %vm505_vm4, %v471_v57, %v504_v63 }
 0x135   : > { %v479_v48 = vrot.slane %v410_v41, %v432_v22 }
 0x136   : > { %v419_v60 = vpop.permute.xlu0 %418 }
 0x137   : > { %v480_v62 = vsel %vm434_vm0, %v479_v48, %v475_v54  ;;  %v493_v11 = vrot.slane %v419_v60, %v1080_v37 }
 0x138   : > { %v416_v51 = vpop.permute.xlu1 %415  ;;  %v508_v14 = vsel %vm507_vm5, %v480_v62, %v506_v8 }
 0x139   : > { %v488_v55 = vrot.slane %v416_v51, %v432_v22 }
 0x13a   : > { %v617_v28 = vpop.permute.xlu0 %616 }
 0x13b   : > { %v489_v2 = vsel %vm434_vm0, %v488_v55, %v484_v59 }
 0x13c   : > { %v422_v4 = vpop.permute.xlu1 %421  ;;  %v510_v17 = vsel %vm509_vm6, %v489_v2, %v508_v14 }
 0x13d   : > { %v497_v12 = vrot.slane %v422_v4, %v432_v22 }
 0x13e   : > { %v638_v30 = vpop.permute.xlu0 %637 }
 0x13f   : > { %v498_v16 = vsel %vm434_vm0, %v497_v12, %v493_v11 }
 0x140   : > { %v512_v19 = vsel %vm511_vm7, %v498_v16, %v510_v17  ;;  %v526_v3 = vpop.permute.xlu1 %525 }
 0x141   : > { %v515_v21 = vsel %vm514_vm8, %v512_v19, 0.0 }
 0x142   : > { %516 = vadd.xlane.f32.xlu0 %v515_v21 }
 0x144   : > { %v540_v10 = vpop.permute.xlu1 %539 }
 0x148   : > { %v547_v25 = vpop.permute.xlu1 %546 }
 0x14c   : > { %v596_v13 = vpop.permute.xlu1 %595 }
 0x150   : > { %v603_v15 = vpop.permute.xlu1 %602 }
 0x154   : > { %v554_v26 = vpop.permute.xlu1 %553 }
 0x158   : > { %644 = vbcast.lane.b32.xlu0 %v642_v23, 256  ;;  %v610_v27 = vpop.permute.xlu1 %609 }
 0x15c   : > { %v561_v29 = vpop.permute.xlu1 %560 }
 0x160   : > { %v568_v18 = vpop.permute.xlu1 %567 }
 0x164   : > { %v624_v20 = vpop.permute.xlu1 %623 }
 0x168   : > { %v575_v36 = vpop.permute.xlu1 %574 }
 0x16c   : > { %v631_v41 = vpop.permute.xlu1 %630 }
 0x170   : > { %v582_v44 = vpop.permute.xlu1 %581 }
 0x174   : > { %v589_v1 = vpop.permute.xlu1 %588 }
 0x1cb   : > { %v517_v31 = vpop.xlane.xlu0 %516 }
 0x1cc   : > { %v528_v32 = vadd.f32 %v526_v3, %v517_v31 }
 0x1ce   : > { %v529_v33 = vmax.f32 %v528_v32, 0.0 }
 0x1cf   : > { %v645_v48 = vpop.permute.xlu0 %644 }
 0x1d0   : > { %v663_v34 = vmul.f32 %v547_v25, %v529_v33  ;;  %v662_v35 = vmul.f32 %v540_v10, %v529_v33  ;;  %v671_v24 = vmul.f32 %v603_v15, %v529_v33  ;;  %v670_v58 = vmul.f32 %v596_v13, %v529_v33 }
 0x1d1   : > { %v672_v22 = vmul.f32 %v610_v27, %v529_v33  ;;  %v664_v38 = vmul.f32 %v554_v26, %v529_v33  ;;  %v673_v39 = vmul.f32 %v617_v28, %v529_v33  ;;  %v665_v40 = vmul.f32 %v561_v29, %v529_v33 }
 0x1d2   : > { %698 = vperm.xlu0 %938, %v663_v34   ;;  %695 = vperm.xlu1 %937, %v662_v35   ;;  %v674_v42 = vmul.f32 %v624_v20, %v529_v33  ;;  %v666_v43 = vmul.f32 %v568_v18, %v529_v33  ;;  %v675_v0 = vmul.f32 %v631_v41, %v529_v33 }
 0x1d3   : > { %v667_v45 = vmul.f32 %v575_v36, %v529_v33  ;;  %v676_v46 = vmul.f32 %v638_v30, %v529_v33  ;;  %v668_v47 = vmul.f32 %v582_v44, %v529_v33  ;;  %v669_v49 = vmul.f32 %v589_v1, %v529_v33 }
 0x1d4   : > { %v677_v50 = vmul.f32 %v645_v48, %v529_v33 }
 0x1d6   : > { %722 = vperm.xlu0 %938, %v671_v24   ;;  %719 = vperm.xlu1 %937, %v670_v58  }
 0x1da   : > { %725 = vperm.xlu0 %938, %v672_v22   ;;  %701 = vperm.xlu1 %937, %v664_v38  }
 0x1de   : > { %728 = vperm.xlu0 %938, %v673_v39   ;;  %704 = vperm.xlu1 %937, %v665_v40  }
 0x1e2   : > { %731 = vperm.xlu0 %938, %v674_v42   ;;  %707 = vperm.xlu1 %937, %v666_v43   ;;  %v829_v42 = vld [vmem:[%s1159_s4] sm:$0xff] }
 0x1e6   : > { %734 = vperm.xlu0 %938, %v675_v0   ;;  %710 = vperm.xlu1 %937, %v667_v45  }
 0x1ea   : > { %737 = vperm.xlu0 %938, %v676_v46   ;;  %713 = vperm.xlu1 %937, %v668_v47  }
 0x1ee   : > { %716 = vperm.xlu1 %937, %v669_v49   ;;  %740 = vperm.xlu0 %938, %v677_v50  }
 0x24d   : > { %v696_v51 = vpop.permute.xlu1 %695  ;;  %v699_v52 = vpop.permute.xlu0 %698 }
 0x24e   : > { %v745_v2 = vrot.slane %v696_v51, %v1080_v37  ;;  %v749_v4 = vrot.slane %v699_v52, %v1080_v37 }
 0x250   : > { %v806_v10 = vsel %vm499_vm1, %v749_v4, %v745_v2 }
 0x251   : > { %v720_v53 = vpop.permute.xlu1 %719  ;;  %v723_v54 = vpop.permute.xlu0 %722 }
 0x252   : > { %v777_v8 = vrot.slane %v720_v53, %v1080_v37  ;;  %v781_v11 = vrot.slane %v723_v54, %v1080_v37 }
 0x254   : > { %v813_v25 = vsel %vm499_vm1, %v781_v11, %v777_v8 }
 0x255   : > { %v702_v55 = vpop.permute.xlu1 %701  ;;  %v726_v56 = vpop.permute.xlu0 %725 }
 0x256   : > { %v753_v12 = vrot.slane %v702_v55, %v1080_v37  ;;  %v785_v14 = vrot.slane %v726_v56, %v1080_v37 }
 0x258   : > { %v807_v26 = vsel %vm501_vm2, %v753_v12, %v806_v10  ;;  %v814_v27 = vsel %vm501_vm2, %v785_v14, %v813_v25 }
 0x259   : > { %v705_v57 = vpop.permute.xlu1 %704  ;;  %v729_v59 = vpop.permute.xlu0 %728 }
 0x25a   : > { %v757_v16 = vrot.slane %v705_v57, %v1080_v37  ;;  %v789_v17 = vrot.slane %v729_v59, %v1080_v37 }
 0x25c   : > { %v808_v30 = vsel %vm503_vm3, %v757_v16, %v807_v26  ;;  %v815_v18 = vsel %vm503_vm3, %v789_v17, %v814_v27 }
 0x25d   : > { %v708_v60 = vpop.permute.xlu1 %707  ;;  %v732_v61 = vpop.permute.xlu0 %731 }
 0x25e   : > { %v761_v19 = vrot.slane %v708_v60, %v1080_v37  ;;  %v793_v21 = vrot.slane %v732_v61, %v1080_v37 }
 0x260   : > { %v809_v31 = vsel %vm505_vm4, %v761_v19, %v808_v30  ;;  %v816_v32 = vsel %vm505_vm4, %v793_v21, %v815_v18 }
 0x261   : > { %v711_v62 = vpop.permute.xlu1 %710  ;;  %v735_v63 = vpop.permute.xlu0 %734 }
 0x262   : > { %v765_v13 = vrot.slane %v711_v62, %v1080_v37  ;;  %v797_v15 = vrot.slane %v735_v63, %v1080_v37 }
 0x264   : > { %v810_v35 = vsel %vm507_vm5, %v765_v13, %v809_v31  ;;  %v817_v20 = vsel %vm507_vm5, %v797_v15, %v816_v32 }
 0x265   : > { %v714_v23 = vpop.permute.xlu1 %713  ;;  %v738_v3 = vpop.permute.xlu0 %737 }
 0x266   : > { %v769_v28 = vrot.slane %v714_v23, %v1080_v37  ;;  %v801_v29 = vrot.slane %v738_v3, %v1080_v37 }
 0x268   : > { %v811_v36 = vsel %vm509_vm6, %v769_v28, %v810_v35  ;;  %v818_v22 = vsel %vm509_vm6, %v801_v29, %v817_v20 }
 0x269   : > { %v717_v33 = vpop.permute.xlu1 %716  ;;  %v741_v34 = vpop.permute.xlu0 %740 }
 0x26a   : > { %v773_v24 = vrot.slane %v717_v33, %v1080_v37  ;;  %v805_v58 = vrot.slane %v741_v34, %v1080_v37  ;;  %v830_v37 = vld [vmem:[%s1159_s4 + $0x8] sm:$0xff] }
 0x26c   : > { %v812_v38 = vsel %vm511_vm7, %v773_v24, %v811_v36  ;;  %v819_v39 = vsel %vm511_vm7, %v805_v58, %v818_v22 }
 0x26d   : > { %v823_v40 = vsel %vm822_vm9, %v812_v38, 0.0  ;;  %v826_v41 = vsel %vm822_vm9, %v819_v39, 0.0 }
 0x26e   : > { %824 = vadd.xlane.f32.xlu1 %v823_v40  ;;  %827 = vadd.xlane.f32.xlu0 %v826_v41 }
 0x2f7   : > { %v825_v43 = vpop.xlane.xlu1 %824  ;;  %v828_v44 = vpop.xlane.xlu0 %827 }
 0x2f8   : > { %v831_v0 = vadd.f32 %v829_v42, %v825_v43  ;;  %v832_v45 = vadd.f32 %v830_v37, %v828_v44 }
 0x2fa   : > { %v833_v46 = vadd.f32 3.0, %v831_v0  ;;  %v834_v47 = vadd.f32 3.0, %v832_v45 }
 0x2fc   : > { %v835_v1 = vmax.f32 %v833_v46, 0.0  ;;  %v836_v48 = vmax.f32 %v834_v47, 0.0 }
 0x2fe   : > { %v837_v49 = vmin.f32 %v835_v1, 6.0  ;;  %v838_v50 = vmin.f32 %v836_v48, 6.0 }
 0x300   : > { %v839_v51 = vmul.f32 0.16666667, %v837_v49  ;;  %v840_v52 = vmul.f32 0.16666667, %v838_v50 }
 0x302   : > { %843 = vperm.xlu0 %938, %v839_v51   ;;  %848 = vperm.xlu1 %937, %v840_v52  }
 0x37d   : > { %v849_v53 = vpop.permute.xlu1 %848  ;;  %v844_v54 = vpop.permute.xlu0 %843 }
 0x37e   : > { %v853_v55 = vmul.f32 %v849_v53, %v1008_v7  ;;  %v854_v56 = vmul.f32 %v849_v53, %v1012_v9  ;;  %v851_v57 = vmul.f32 %v844_v54, %v1004_v5  ;;  %v852_v59 = vmul.f32 %v844_v54, %v1006_v6 }
 0x380   : > { %857 = vst [vmem:[%s224_s13 + $0x10] sm:$0xff] %v853_v55  ;;  %858 = vst [vmem:[%s224_s13 + $0x18] sm:$0xff] %v854_v56 }
 0x381   : > { %855 = vst [vmem:[%s224_s13] sm:$0xff] %v851_v57  ;;  %856 = vst [vmem:[%s224_s13 + $0x8] sm:$0xff] %v852_v59 }
 0x382 PF: > { %s15_s18 = sadd.s32 1, %s945_s18  }
 0x383   : > { %p12_p4 = scmp.ge.s32.totalorder %s15_s18, 4  }
 0x385   :  { %14 = sbr.rel (!%p12_p4) target bundleno = 1 (0x1), region = 70 }

</bundles_post_ra>
